<compile_context>
chip_gen: v6e
topology: v6e:2x2x1
jax: 0.10.0
libtpu: 0.0.40
codegen_flags: <defaults>
</compile_context>

<pallas_src>
import functools

import jax
import jax.numpy as jnp
from jax.experimental import pallas as pl
from jax.experimental.pallas import tpu as pltpu


_LANE = 128


def _round_up(x, m):
    return ((x + m - 1) // m) * m


def _soft_dot_attn_kernel(src_len, h_ref, e_ref, wc_ref, wh_ref,
                          h_tilde_ref, attn_w_ref, *maybe_e_ref):
    """One batch block.

    h_ref  : (Bb, T,  Hp) compute dtype (f32/bf16), zero-padded along H
    e_ref  : (Bb, Sp, Hp) compute dtype, zero-padded along S and H
    wc_ref : (Hp, Hp) f32 = linear_out.weight[:, :H].T (zero-padded)
    wh_ref : (Hp, Hp) f32 = linear_out.weight[:, H:].T (zero-padded)
    Outputs are lane-dense (Sp / Hp multiples of 128); padding is sliced off
    by the wrapper.
    """
    h = h_ref[...]
    e = e_ref[...]

    # attn_energies[b] = hidden[b] @ encoder_outputs[b]^T -- batched contraction
    # over H (no explicit transpose of e); f32 accumulation on the MXU.
    energies = jnp.einsum("bth,bsh->bts", h, e,
                          preferred_element_type=jnp.float32)   # (Bb, T, Sp) f32

    # Store energies as soon as they are ready (frees the live range before the
    # context / projection matmuls).
    if maybe_e_ref:
        maybe_e_ref[0][...] = energies.astype(maybe_e_ref[0].dtype)

    bb, t, sp = energies.shape
    if sp > src_len:
        # Padded source columns get a huge negative energy -> zero softmax weight.
        col = jax.lax.broadcasted_iota(jnp.int32, (bb, t, sp), 2)
        masked = jnp.where(col < src_len, energies, jnp.float32(-1e30))
    else:
        masked = energies

    # Exact, numerically stable softmax over src_len (weights sum to 1).
    m = jnp.max(masked, axis=-1, keepdims=True)
    p = jnp.exp(masked - m)
    w = p / jnp.sum(p, axis=-1, keepdims=True)                  # (Bb, T, Sp) f32
    attn_w_ref[...] = w.astype(attn_w_ref.dtype)

    # weighted_context[b] = attn_weights[b] @ encoder_outputs[b]
    ctx = jnp.einsum("bts,bsh->bth", w.astype(e.dtype), e,
                     preferred_element_type=jnp.float32)        # (Bb, T, Hp) f32

    # h_tilde = tanh([ctx ; h] @ W^T) = tanh(ctx @ W[:, :H]^T + h @ W[:, H:]^T)
    # with split / pre-transposed weights from the wrapper.  Flatten (Bb, T) in
    # f32 (layout-clean for f32 tiles) so the projection is a single pair of
    # (Bb*T, Hp) x (Hp, Hp) MXU matmuls plus a VPU add.
    hp = h.shape[-1]
    ctx_f = ctx.reshape(bb * t, hp)
    h_f = h.astype(jnp.float32).reshape(bb * t, hp)
    proj = (jnp.dot(ctx_f, wc_ref[...], preferred_element_type=jnp.float32)
            + jnp.dot(h_f, wh_ref[...], preferred_element_type=jnp.float32))
    h_tilde_ref[...] = jnp.tanh(proj).reshape(bb, t, hp).astype(h_tilde_ref.dtype)


@functools.partial(jax.jit,
                   static_argnames=("block_b", "use_bf16", "return_energies"))
def soft_dot_attention(hidden, encoder_outputs, w_out, *,
                       block_b=None, use_bf16=False, return_energies=True):
    """hidden: (B,T,H), encoder_outputs: (B,S,H), w_out: (H, 2H)."""
    B, T, H = hidden.shape
    _, S, _ = encoder_outputs.shape
    assert w_out.shape == (H, 2 * H)

    Hp = _round_up(H, _LANE)        # lane-dense hidden dim
    Sp = _round_up(S, _LANE)        # lane-dense source dim

    compute_dtype = jnp.bfloat16 if use_bf16 else jnp.float32
    in_itemsize = jnp.dtype(compute_dtype).itemsize

    # Fewer, fatter grid steps: target block_b*T >= 256 rows for the projection
    # matmul, subject to the VMEM budget below.
    if block_b is None:
        block_b = max(1, 256 // max(T, 1))
    block_b = max(1, min(block_b, B))

    n_ts_outs = 2 if return_energies else 1     # attn_w (+ attn_e)

    def _footprint(bb):
        # Double-buffered inputs + outputs (BlockSpec pipelining) + both weights.
        ins = 2 * bb * (T * Hp + Sp * Hp) * in_itemsize
        outs = 2 * bb * (T * Hp + n_ts_outs * T * Sp) * 4
        wts = 2 * 2 * Hp * Hp * 4
        return ins + outs + wts

    VMEM_BUDGET = 48 * 1024 * 1024              # conservative: fits v7x's 64 MiB
    while block_b > 1 and _footprint(block_b) > VMEM_BUDGET:
        block_b = max(1, block_b // 2)
    vmem_limit = int(min(max(int(_footprint(block_b) * 1.25),
                             32 * 1024 * 1024),
                         60 * 1024 * 1024))

    # Zero-pad inputs to lane-dense shapes (padded H contributes 0 to every dot;
    # padded S columns are masked to -1e30 in-kernel).
    h_in = hidden.astype(compute_dtype)
    e_in = encoder_outputs.astype(compute_dtype)
    if Hp != H:
        h_in = jnp.pad(h_in, ((0, 0), (0, 0), (0, Hp - H)))
        e_in = jnp.pad(e_in, ((0, 0), (0, 0), (0, Hp - H)))
    if Sp != S:
        e_in = jnp.pad(e_in, ((0, 0), (0, Sp - S), (0, 0)))

    # Split + transpose linear_out's weight ONCE outside the kernel.
    w_ctx = w_out[:, :H].T.astype(jnp.float32)
    w_hid = w_out[:, H:].T.astype(jnp.float32)
    if Hp != H:
        pad = ((0, Hp - H), (0, Hp - H))
        w_ctx = jnp.pad(w_ctx, pad)
        w_hid = jnp.pad(w_hid, pad)

    out_shapes = [
        jax.ShapeDtypeStruct((B, T, Hp), jnp.float32),   # h_tilde (padded)
        jax.ShapeDtypeStruct((B, T, Sp), jnp.float32),   # attn_weights (padded)
    ]
    out_specs = [
        pl.BlockSpec((block_b, T, Hp), lambda b: (b, 0, 0)),
        pl.BlockSpec((block_b, T, Sp), lambda b: (b, 0, 0)),
    ]
    if return_energies:
        out_shapes.append(jax.ShapeDtypeStruct((B, T, Sp), jnp.float32))
        out_specs.append(pl.BlockSpec((block_b, T, Sp), lambda b: (b, 0, 0)))

    grid_spec = pltpu.PrefetchScalarGridSpec(
        num_scalar_prefetch=0,
        grid=(pl.cdiv(B, block_b),),
        in_specs=[
            pl.BlockSpec((block_b, T, Hp), lambda b: (b, 0, 0)),
            pl.BlockSpec((block_b, Sp, Hp), lambda b: (b, 0, 0)),
            pl.BlockSpec((Hp, Hp), lambda b: (0, 0)),   # resident across steps
            pl.BlockSpec((Hp, Hp), lambda b: (0, 0)),
        ],
        out_specs=out_specs,
    )

    outs = pl.pallas_call(
        functools.partial(_soft_dot_attn_kernel, S),
        out_shape=tuple(out_shapes),
        grid_spec=grid_spec,
        compiler_params=pltpu.CompilerParams(
            dimension_semantics=("parallel",),
            vmem_limit_bytes=vmem_limit),
    )(h_in, e_in, w_ctx, w_hid)

    h_tilde = outs[0][:, :, :H] if Hp != H else outs[0]
    attn_w = outs[1][:, :, :S] if Sp != S else outs[1]
    if return_energies:
        attn_e = outs[2][:, :, :S] if Sp != S else outs[2]
        return h_tilde, attn_w, attn_e
    return h_tilde, attn_w


def soft_dot_attention_ref(hidden, encoder_outputs, w_out):
    """Pure-JAX reference matching the PyTorch forward() (full-f32 precision)."""
    prec = jax.lax.Precision.HIGHEST
    energies = jnp.einsum("bth,bsh->bts", hidden, encoder_outputs, precision=prec)
    weights = jax.nn.softmax(energies, axis=-1)
    ctx = jnp.einsum("bts,bsh->bth", weights, encoder_outputs, precision=prec)
    cat = jnp.concatenate([ctx, hidden], axis=-1)
    h_tilde = jnp.tanh(jnp.einsum("btk,hk->bth", cat, w_out, precision=prec))
    return h_tilde, weights, energies


if __name__ == "__main__":
    B, T, S, H = 2, 8, 8, 32   # batch, trg_len, src_len, trg_hidden_dim

    key = jax.random.PRNGKey(0)
    k_h, k_e, k_w = jax.random.split(key, 3)
    hidden = jax.random.normal(k_h, (B, T, H), dtype=jnp.float32)
    encoder_outputs = jax.random.normal(k_e, (B, S, H), dtype=jnp.float32)
    # Deterministic init of linear_out weight (trg_dim, 2*trg_dim), bias=False.
    bound = 1.0 / jnp.sqrt(2.0 * H)
    w_out = jax.random.uniform(k_w, (H, 2 * H), dtype=jnp.float32,
                               minval=-bound, maxval=bound)

    h_ref, w_ref, e_ref = soft_dot_attention_ref(hidden, encoder_outputs, w_out)

    # --- f32 path (default) -------------------------------------------------
    h_tilde, attn_w, attn_e = soft_dot_attention(hidden, encoder_outputs, w_out)
    jax.block_until_ready((h_tilde, attn_w, attn_e))

    assert h_tilde.shape == (B, T, H)
    assert attn_w.shape == (B, T, S)
    assert attn_e.shape == (B, T, S)
    # Tolerances cover MXU f32-matmul precision modes across TPU generations.
    assert jnp.allclose(attn_e, e_ref, atol=5e-2, rtol=2e-2)
    assert jnp.allclose(attn_w, w_ref, atol=5e-2, rtol=2e-2)
    assert jnp.allclose(h_tilde, h_ref, atol=5e-2, rtol=2e-2)
    # Exact softmax: weights sum to 1 over the real (unpadded) source positions.
    assert jnp.allclose(jnp.sum(attn_w, axis=-1), 1.0, atol=1e-5)

    # --- no-energies variant (drops B*T*S*4 bytes of HBM writeback) ----------
    h_tilde2, attn_w2 = soft_dot_attention(hidden, encoder_outputs, w_out,
                                           return_energies=False)
    jax.block_until_ready((h_tilde2, attn_w2))
    assert jnp.allclose(h_tilde2, h_ref, atol=5e-2, rtol=2e-2)
    assert jnp.allclose(attn_w2, w_ref, atol=5e-2, rtol=2e-2)

    # --- bf16-MXU input path (halves h/e read traffic; softmax/tanh stay f32) -
    h_tilde_b, attn_w_b, attn_e_b = soft_dot_attention(
        hidden, encoder_outputs, w_out, use_bf16=True)
    jax.block_until_ready((h_tilde_b, attn_w_b, attn_e_b))
    assert jnp.allclose(attn_e_b, e_ref, atol=2e-1, rtol=2e-1)
    assert jnp.allclose(attn_w_b, w_ref, atol=2e-1, rtol=2e-1)
    assert jnp.allclose(h_tilde_b, h_ref, atol=2e-1, rtol=2e-1)

    print("KERNEL_OK")
</pallas_src>

<mosaic_0001>
module attributes {stable_mosaic.version = 11 : i64} {
  func.func @_soft_dot_attn_kernel(%arg0: i32, %arg1: memref<2x8x128xf32, #tpu.memory_space<vmem>>, %arg2: memref<2x128x128xf32, #tpu.memory_space<vmem>>, %arg3: memref<128x128xf32, #tpu.memory_space<vmem>>, %arg4: memref<128x128xf32, #tpu.memory_space<vmem>>, %arg5: memref<2x8x128xf32, #tpu.memory_space<vmem>>, %arg6: memref<2x8x128xf32, #tpu.memory_space<vmem>>, %arg7: memref<2x8x128xf32, #tpu.memory_space<vmem>>) attributes {dimension_semantics = [#tpu.dimension_semantics<parallel>], iteration_bounds = array<i64: 1>, scalar_prefetch = 0 : i64, scratch_operands = 0 : i64, tpu.core_type = #tpu.core_type<tc>, window_params = [{transform_indices = @transform_0, window_bounds = array<i64: 2, 8, 128>}, {transform_indices = @transform_1, window_bounds = array<i64: 2, 128, 128>}, {pipeline_mode = #tpu.pipeline_mode<synchronous>, transform_indices = @transform_2, window_bounds = array<i64: 128, 128>}, {pipeline_mode = #tpu.pipeline_mode<synchronous>, transform_indices = @transform_3, window_bounds = array<i64: 128, 128>}, {transform_indices = @transform_4, window_bounds = array<i64: 2, 8, 128>}, {transform_indices = @transform_5, window_bounds = array<i64: 2, 8, 128>}, {transform_indices = @transform_6, window_bounds = array<i64: 2, 8, 128>}]} {
    %c0 = arith.constant 0 : index
    %c0_0 = arith.constant 0 : index
    %c0_1 = arith.constant 0 : index
    %0 = vector.load %arg1[%c0, %c0_0, %c0_1] : memref<2x8x128xf32, #tpu.memory_space<vmem>>, vector<2x8x128xf32>
    %c0_2 = arith.constant 0 : index
    %c0_3 = arith.constant 0 : index
    %c0_4 = arith.constant 0 : index
    %1 = vector.load %arg2[%c0_2, %c0_3, %c0_4] : memref<2x128x128xf32, #tpu.memory_space<vmem>>, vector<2x128x128xf32>
    "tpu.trace_start"() <{level = 10 : i32, message = "bth,bsh->bts"}> : () -> ()
    %cst = arith.constant dense<0.000000e+00> : vector<2x8x128xf32>
    %2 = tpu.matmul %0, %1, %cst {dimension_numbers = #tpu.dot_dimension_numbers<[2], [2], [1], [1], [0, 0, 0, 1, 1, 1], [0], [0]>} : vector<2x8x128xf32>, vector<2x128x128xf32>, vector<2x8x128xf32> -> vector<2x8x128xf32>
    "tpu.trace_stop"() : () -> ()
    %c0_5 = arith.constant 0 : index
    %c0_6 = arith.constant 0 : index
    %c0_7 = arith.constant 0 : index
    %3 = vector.load %arg7[%c0_5, %c0_6, %c0_7] : memref<2x8x128xf32, #tpu.memory_space<vmem>>, vector<2x8x128xf32>
    tpu.vector_store %arg7[%c0_5, %c0_6, %c0_7], %2 {strides = array<i32>} : memref<2x8x128xf32, #tpu.memory_space<vmem>>, vector<2x8x128xf32>,
    %4 = tpu.iota {dimensions = array<i32: 2>} : vector<2x8x128xi32>
    %c8_i32 = arith.constant 8 : i32
    %5 = vector.broadcast %c8_i32 : i32 to vector<2x8x128xi32>
    %6 = arith.cmpi slt, %4, %5 : vector<2x8x128xi32>
    %cst_8 = arith.constant -1.000000e+30 : f32
    %7 = vector.broadcast %cst_8 : f32 to vector<2x8x128xf32>
    %8 = arith.select %6, %2, %7 : vector<2x8x128xi1>, vector<2x8x128xf32>
    %cst_9 = arith.constant dense<0xFF800000> : vector<2x8xf32>
    %9 = vector.multi_reduction <maximumf>, %8, %cst_9 [2] : vector<2x8x128xf32> to vector<2x8xf32>
    %10 = vector.shape_cast %9 : vector<2x8xf32> to vector<2x8x1xf32>
    %11 = vector.broadcast %10 : vector<2x8x1xf32> to vector<2x8x128xf32>
    %12 = arith.subf %8, %11 : vector<2x8x128xf32>
    %13 = math.exp %12 : vector<2x8x128xf32>
    %cst_10 = arith.constant dense<0.000000e+00> : vector<2x8xf32>
    %14 = vector.multi_reduction <add>, %13, %cst_10 [2] : vector<2x8x128xf32> to vector<2x8xf32>
    %15 = vector.shape_cast %14 : vector<2x8xf32> to vector<2x8x1xf32>
    %16 = vector.broadcast %15 : vector<2x8x1xf32> to vector<2x8x128xf32>
    %17 = arith.divf %13, %16 : vector<2x8x128xf32>
    %c0_11 = arith.constant 0 : index
    %c0_12 = arith.constant 0 : index
    %c0_13 = arith.constant 0 : index
    %18 = vector.load %arg6[%c0_11, %c0_12, %c0_13] : memref<2x8x128xf32, #tpu.memory_space<vmem>>, vector<2x8x128xf32>
    tpu.vector_store %arg6[%c0_11, %c0_12, %c0_13], %17 {strides = array<i32>} : memref<2x8x128xf32, #tpu.memory_space<vmem>>, vector<2x8x128xf32>,
    "tpu.trace_start"() <{level = 10 : i32, message = "bts,bsh->bth"}> : () -> ()
    %cst_14 = arith.constant dense<0.000000e+00> : vector<2x8x128xf32>
    %19 = tpu.matmul %17, %1, %cst_14 {dimension_numbers = #tpu.dot_dimension_numbers<[2], [1], [1], [2], [0, 0, 0, 1, 1, 2], [0], [0]>} : vector<2x8x128xf32>, vector<2x128x128xf32>, vector<2x8x128xf32> -> vector<2x8x128xf32>
    "tpu.trace_stop"() : () -> ()
    %20 = vector.shape_cast %19 : vector<2x8x128xf32> to vector<16x128xf32>
    %21 = vector.shape_cast %0 : vector<2x8x128xf32> to vector<16x128xf32>
    %c0_15 = arith.constant 0 : index
    %c0_16 = arith.constant 0 : index
    %22 = vector.load %arg3[%c0_15, %c0_16] : memref<128x128xf32, #tpu.memory_space<vmem>>, vector<128x128xf32>
    %cst_17 = arith.constant dense<0.000000e+00> : vector<16x128xf32>
    %23 = tpu.matmul %20, %22, %cst_17 {dimension_numbers = #tpu.dot_dimension_numbers<[1], [0], [0], [1], [0, 0, 1, 1], [], []>} : vector<16x128xf32>, vector<128x128xf32>, vector<16x128xf32> -> vector<16x128xf32>
    %c0_18 = arith.constant 0 : index
    %c0_19 = arith.constant 0 : index
    %24 = vector.load %arg4[%c0_18, %c0_19] : memref<128x128xf32, #tpu.memory_space<vmem>>, vector<128x128xf32>
    %cst_20 = arith.constant dense<0.000000e+00> : vector<16x128xf32>
    %25 = tpu.matmul %21, %24, %cst_20 {dimension_numbers = #tpu.dot_dimension_numbers<[1], [0], [0], [1], [0, 0, 1, 1], [], []>} : vector<16x128xf32>, vector<128x128xf32>, vector<16x128xf32> -> vector<16x128xf32>
    %26 = arith.addf %23, %25 : vector<16x128xf32>
    %27 = math.tanh %26 : vector<16x128xf32>
    %28 = vector.shape_cast %27 : vector<16x128xf32> to vector<2x8x128xf32>
    %c0_21 = arith.constant 0 : index
    %c0_22 = arith.constant 0 : index
    %c0_23 = arith.constant 0 : index
    %29 = vector.load %arg5[%c0_21, %c0_22, %c0_23] : memref<2x8x128xf32, #tpu.memory_space<vmem>>, vector<2x8x128xf32>
    tpu.vector_store %arg5[%c0_21, %c0_22, %c0_23], %28 {strides = array<i32>} : memref<2x8x128xf32, #tpu.memory_space<vmem>>, vector<2x8x128xf32>,
    return
  }
  func.func @transform_0(%arg0: i32) -> (i32, i32, i32) {
    %c0_i32 = arith.constant 0 : i32
    %c0_i32_0 = arith.constant 0 : i32
    %c0_i32_1 = arith.constant 0 : i32
    return %arg0, %c0_i32, %c0_i32_0 : i32, i32, i32
  }
  func.func @transform_1(%arg0: i32) -> (i32, i32, i32) {
    %c0_i32 = arith.constant 0 : i32
    %c0_i32_0 = arith.constant 0 : i32
    %c0_i32_1 = arith.constant 0 : i32
    return %arg0, %c0_i32, %c0_i32_0 : i32, i32, i32
  }
  func.func @transform_2(%arg0: i32) -> (i32, i32) {
    %c0_i32 = arith.constant 0 : i32
    %c0_i32_0 = arith.constant 0 : i32
    %c0_i32_1 = arith.constant 0 : i32
    return %c0_i32, %c0_i32_0 : i32, i32
  }
  func.func @transform_3(%arg0: i32) -> (i32, i32) {
    %c0_i32 = arith.constant 0 : i32
    %c0_i32_0 = arith.constant 0 : i32
    %c0_i32_1 = arith.constant 0 : i32
    return %c0_i32, %c0_i32_0 : i32, i32
  }
  func.func @transform_4(%arg0: i32) -> (i32, i32, i32) {
    %c0_i32 = arith.constant 0 : i32
    %c0_i32_0 = arith.constant 0 : i32
    %c0_i32_1 = arith.constant 0 : i32
    return %arg0, %c0_i32, %c0_i32_0 : i32, i32, i32
  }
  func.func @transform_5(%arg0: i32) -> (i32, i32, i32) {
    %c0_i32 = arith.constant 0 : i32
    %c0_i32_0 = arith.constant 0 : i32
    %c0_i32_1 = arith.constant 0 : i32
    return %arg0, %c0_i32, %c0_i32_0 : i32, i32, i32
  }
  func.func @transform_6(%arg0: i32) -> (i32, i32, i32) {
    %c0_i32 = arith.constant 0 : i32
    %c0_i32_0 = arith.constant 0 : i32
    %c0_i32_1 = arith.constant 0 : i32
    return %arg0, %c0_i32, %c0_i32_0 : i32, i32, i32
  }
}

</mosaic_0001>

<bundles_post_ra>
// kernel: soft_dot_attention.1
= control target key start
LH: loop header
LB: loop body
LE: loop exit
PB: predicated region body
PF: predicated region fallthrough
CT: control target
= control target key end

     0   :  { %12 = vsyncpa [#allocation3], 0  ;;  %v993_v2 = vmov 0.0   ;;  %vm994_vm0 = vmmov 0   ;;  %s1459_s0 = inlined_call_operand.vmem [shape: f32[2,8,128], index: 0, kind: input, shape index: {}]   ;;  %s1460_s1 = inlined_call_operand.vmem [shape: f32[2,128,128], index: 1, kind: input, shape index: {}]   ;;  %s1461_s2 = inlined_call_operand.vmem [shape: f32[128,128], index: 2, kind: input, shape index: {}]   ;;  %s1462_s3 = inlined_call_operand.vmem [shape: f32[128,128], index: 3, kind: input, shape index: {}]   ;;  %s1463_s4 = inlined_call_operand.hbm [shape: f32[2,8,128], index: 4, kind: output, shape index: {0}]   ;;  %s1464_s5 = inlined_call_operand.hbm [shape: f32[2,8,128], index: 5, kind: output, shape index: {1}]   ;;  %s1465_s6 = inlined_call_operand.hbm [shape: f32[2,8,128], index: 6, kind: output, shape index: {2}]  }
   0x1   :  { %v1038_v0 = vld [vmem:[%s1460_s1 + $0x78] sm:$0xff]  ;;  %700 = vmatprep.subr.mxu0 %v993_v2  ;;  %735 = vmatprep.subr.mxu1 %v993_v2  ;;  %v1053_v3 = vld [vmem:[%s1460_s1 + $0x70] sm:$0xff]  ;;  %v1071_v5 = vld [vmem:[%s1460_s1 + $0x68] sm:$0xff] }
   0x2   :  { %v1043_v1 = vld [vmem:[%s1460_s1 + $0xf8] sm:$0xff]  ;;  %701 = vmatpush3.xpose.msra.mxu0 %v1038_v0  ;;  %v1059_v4 = vld [vmem:[%s1460_s1 + $0xf0] sm:$0xff]  ;;  %732 = vmatprep.mubr.msk.f32.mxu0 %vm994_vm0, %v993_v2  ;;  %v1077_v6 = vld [vmem:[%s1460_s1 + $0xe8] sm:$0xff] }
   0x3   :  { %736 = vmatpush3.xpose.msra.mxu1 %v1043_v1  ;;  %702 = vmatprep.subr.mxu0 %v993_v2  ;;  %v1085_v7 = vld [vmem:[%s1460_s1 + $0x60] sm:$0xff] }
   0x4   :  { %737 = vmatprep.subr.mxu1 %v993_v2  ;;  %767 = vmatprep.mubr.msk.f32.mxu1 %vm994_vm0, %v993_v2  ;;  %v1091_v8 = vld [vmem:[%s1460_s1 + $0xe0] sm:$0xff] }
   0x6   :  { %703 = vmatpush3.xpose.msra.mxu0 %v1053_v3 }
   0x7   :  { %738 = vmatpush3.xpose.msra.mxu1 %v1059_v4  ;;  %704 = vmatprep.subr.mxu0 %v993_v2 }
   0x8   :  { %739 = vmatprep.subr.mxu1 %v993_v2 }
   0xa   :  { %705 = vmatpush3.xpose.msra.mxu0 %v1071_v5 }
   0xb   :  { %740 = vmatpush3.xpose.msra.mxu1 %v1077_v6  ;;  %706 = vmatprep.subr.mxu0 %v993_v2 }
   0xc   :  { %741 = vmatprep.subr.mxu1 %v993_v2 }
   0xd   :  { %13 = vsyncpa [#allocation5], 0  ;;  %v1099_v9 = vld [vmem:[%s1460_s1 + $0x58] sm:$0xff]  ;;  %v1113_v11 = vld [vmem:[%s1460_s1 + $0x50] sm:$0xff]  ;;  %v198_v35 = vlaneseq }
   0xe   :  { %707 = vmatpush3.xpose.msra.mxu0 %v1085_v7  ;;  %v1105_v10 = vld [vmem:[%s1460_s1 + $0xd8] sm:$0xff]  ;;  %v1119_v12 = vld [vmem:[%s1460_s1 + $0xd0] sm:$0xff]  ;;  %v1127_v13 = vld [vmem:[%s1460_s1 + $0x48] sm:$0xff] }
   0xf   :  { %742 = vmatpush3.xpose.msra.mxu1 %v1091_v8  ;;  %708 = vmatprep.subr.mxu0 %v993_v2  ;;  %v1133_v14 = vld [vmem:[%s1460_s1 + $0xc8] sm:$0xff]  ;;  %v1141_v15 = vld [vmem:[%s1460_s1 + $0x40] sm:$0xff]  ;;  %v1155_v17 = vld [vmem:[%s1460_s1 + $0x38] sm:$0xff]  ;;  %v199_v36 = vand.u32 127, %v198_v35 }
  0x10   :  { %743 = vmatprep.subr.mxu1 %v993_v2  ;;  %v1147_v16 = vld [vmem:[%s1460_s1 + $0xc0] sm:$0xff]  ;;  %v1161_v18 = vld [vmem:[%s1460_s1 + $0xb8] sm:$0xff]  ;;  %v1169_v19 = vld [vmem:[%s1460_s1 + $0x30] sm:$0xff] }
  0x11   :  { %v1175_v20 = vld [vmem:[%s1460_s1 + $0xb0] sm:$0xff]  ;;  %v1183_v21 = vld [vmem:[%s1460_s1 + $0x28] sm:$0xff]  ;;  %v1197_v23 = vld [vmem:[%s1460_s1 + $0x20] sm:$0xff]  ;;  %vm200_vm1 = vcmp.lt.s32.totalorder %v199_v36, 8 }
  0x12   :  { %709 = vmatpush3.xpose.msra.mxu0 %v1099_v9  ;;  %v1189_v22 = vld [vmem:[%s1460_s1 + $0xa8] sm:$0xff]  ;;  %v1203_v24 = vld [vmem:[%s1460_s1 + $0xa0] sm:$0xff]  ;;  %v1211_v25 = vld [vmem:[%s1460_s1 + $0x18] sm:$0xff] }
  0x13   :  { %744 = vmatpush3.xpose.msra.mxu1 %v1105_v10  ;;  %710 = vmatprep.subr.mxu0 %v993_v2  ;;  %v1217_v26 = vld [vmem:[%s1460_s1 + $0x98] sm:$0xff]  ;;  %v1225_v27 = vld [vmem:[%s1460_s1 + $0x10] sm:$0xff]  ;;  %v1239_v29 = vld [vmem:[%s1460_s1 + $0x8] sm:$0xff] }
  0x14   :  { %745 = vmatprep.subr.mxu1 %v993_v2  ;;  %v1231_v28 = vld [vmem:[%s1460_s1 + $0x90] sm:$0xff]  ;;  %v1245_v30 = vld [vmem:[%s1460_s1 + $0x88] sm:$0xff]  ;;  %v1253_v31 = vld [vmem:[%s1460_s1] sm:$0xff] }
  0x15   :  { %v1259_v32 = vld [vmem:[%s1460_s1 + $0x80] sm:$0xff]  ;;  %v1271_v34 = vld [vmem:[%s1459_s0 + $0x8] sm:$0xff]  ;;  %v394_v51 = vld [vmem:[%s1462_s3 + $0x78] sm:$0xff] }
  0x16   :  { %711 = vmatpush3.xpose.msra.mxu0 %v1113_v11  ;;  %v1266_v33 = vld [vmem:[%s1459_s0] sm:$0xff]  ;;  %v378_v52 = vld [vmem:[%s1461_s2 + $0x78] sm:$0xff]  ;;  %v393_v57 = vld [vmem:[%s1462_s3 + $0x70] sm:$0xff] }
  0x17   :  { %746 = vmatpush3.xpose.msra.mxu1 %v1119_v12  ;;  %712 = vmatprep.subr.mxu0 %v993_v2  ;;  %v392_v59 = vld [vmem:[%s1462_s3 + $0x68] sm:$0xff]  ;;  %v377_v61 = vld [vmem:[%s1461_s2 + $0x70] sm:$0xff]  ;;  %v391_v62 = vld [vmem:[%s1462_s3 + $0x60] sm:$0xff] }
  0x18   :  { %747 = vmatprep.subr.mxu1 %v993_v2  ;;  %v376_v63 = vld [vmem:[%s1461_s2 + $0x68] sm:$0xff] }
  0x1a   :  { %713 = vmatpush3.xpose.msra.mxu0 %v1127_v13 }
  0x1b   :  { %748 = vmatpush3.xpose.msra.mxu1 %v1133_v14  ;;  %714 = vmatprep.subr.mxu0 %v993_v2 }
  0x1c   :  { %749 = vmatprep.subr.mxu1 %v993_v2 }
  0x1e   :  { %715 = vmatpush3.xpose.msra.mxu0 %v1141_v15 }
  0x1f   :  { %750 = vmatpush3.xpose.msra.mxu1 %v1147_v16  ;;  %716 = vmatprep.subr.mxu0 %v993_v2 }
  0x20   :  { %751 = vmatprep.subr.mxu1 %v993_v2 }
  0x22   :  { %717 = vmatpush3.xpose.msra.mxu0 %v1155_v17 }
  0x23   :  { %752 = vmatpush3.xpose.msra.mxu1 %v1161_v18  ;;  %718 = vmatprep.subr.mxu0 %v993_v2 }
  0x24   :  { %753 = vmatprep.subr.mxu1 %v993_v2 }
  0x26   :  { %719 = vmatpush3.xpose.msra.mxu0 %v1169_v19 }
  0x27   :  { %754 = vmatpush3.xpose.msra.mxu1 %v1175_v20  ;;  %720 = vmatprep.subr.mxu0 %v993_v2 }
  0x28   :  { %755 = vmatprep.subr.mxu1 %v993_v2 }
  0x2a   :  { %721 = vmatpush3.xpose.msra.mxu0 %v1183_v21 }
  0x2b   :  { %756 = vmatpush3.xpose.msra.mxu1 %v1189_v22  ;;  %722 = vmatprep.subr.mxu0 %v993_v2 }
  0x2c   :  { %757 = vmatprep.subr.mxu1 %v993_v2 }
  0x2e   :  { %723 = vmatpush3.xpose.msra.mxu0 %v1197_v23 }
  0x2f   :  { %758 = vmatpush3.xpose.msra.mxu1 %v1203_v24  ;;  %724 = vmatprep.subr.mxu0 %v993_v2 }
  0x30   :  { %759 = vmatprep.subr.mxu1 %v993_v2 }
  0x32   :  { %725 = vmatpush3.xpose.msra.mxu0 %v1211_v25 }
  0x33   :  { %760 = vmatpush3.xpose.msra.mxu1 %v1217_v26  ;;  %726 = vmatprep.subr.mxu0 %v993_v2 }
  0x34   :  { %761 = vmatprep.subr.mxu1 %v993_v2 }
  0x36   :  { %727 = vmatpush3.xpose.msra.mxu0 %v1225_v27 }
  0x37   :  { %762 = vmatpush3.xpose.msra.mxu1 %v1231_v28  ;;  %728 = vmatprep.subr.mxu0 %v993_v2 }
  0x38   :  { %763 = vmatprep.subr.mxu1 %v993_v2 }
  0x3a   :  { %729 = vmatpush3.xpose.msra.mxu0 %v1239_v29 }
  0x3b   :  { %764 = vmatpush3.xpose.msra.mxu1 %v1245_v30  ;;  %730 = vmatprep.subr.mxu0 %v993_v2 }
  0x3c   :  { %765 = vmatprep.subr.mxu1 %v993_v2 }
  0x3e   :  { %731 = vmatpush3.xpose.msra.mxu0 %v1253_v31 }
  0x3f   :  { %766 = vmatpush3.xpose.msra.mxu1 %v1259_v32  ;;  %770 = vmatprep.subr.mxu0 %v993_v2 }
  0x40   :  { %805 = vmatprep.subr.mxu1 %v993_v2 }
  0x41   :  { %733 = vmatmul.mubr.f32.vlgmr.msra.gmra.mxu0 %v1266_v33 }
  0x42   :  { %768 = vmatmul.mubr.f32.vlgmr.msra.gmra.mxu1 %v1271_v34  ;;  %771 = vmatpush3.msra.mxu0 %v1038_v0  ;;  %v390_v0 = vld [vmem:[%s1462_s3 + $0x58] sm:$0xff] }
  0x43   :  { %806 = vmatpush3.msra.mxu1 %v1043_v1  ;;  %772 = vmatprep.subr.mxu0 %v993_v2  ;;  %v375_v1 = vld [vmem:[%s1461_s2 + $0x60] sm:$0xff] }
  0x44   :  { %807 = vmatprep.subr.mxu1 %v993_v2  ;;  %773 = vmatpush3.msra.mxu0 %v1053_v3  ;;  %v374_v3 = vld [vmem:[%s1461_s2 + $0x58] sm:$0xff] }
  0x45   :  { %808 = vmatpush3.msra.mxu1 %v1059_v4  ;;  %774 = vmatprep.subr.mxu0 %v993_v2  ;;  %v388_v4 = vld [vmem:[%s1462_s3 + $0x48] sm:$0xff] }
  0x46   :  { %809 = vmatprep.subr.mxu1 %v993_v2  ;;  %775 = vmatpush3.msra.mxu0 %v1071_v5  ;;  %v373_v5 = vld [vmem:[%s1461_s2 + $0x50] sm:$0xff] }
  0x47   :  { %810 = vmatpush3.msra.mxu1 %v1077_v6  ;;  %776 = vmatprep.subr.mxu0 %v993_v2  ;;  %v387_v6 = vld [vmem:[%s1462_s3 + $0x40] sm:$0xff] }
  0x48   :  { %811 = vmatprep.subr.mxu1 %v993_v2  ;;  %777 = vmatpush3.msra.mxu0 %v1085_v7  ;;  %v372_v7 = vld [vmem:[%s1461_s2 + $0x48] sm:$0xff] }
  0x49   :  { %812 = vmatpush3.msra.mxu1 %v1091_v8  ;;  %778 = vmatprep.subr.mxu0 %v993_v2  ;;  %v386_v8 = vld [vmem:[%s1462_s3 + $0x38] sm:$0xff] }
  0x4a   :  { %813 = vmatprep.subr.mxu1 %v993_v2  ;;  %779 = vmatpush3.msra.mxu0 %v1099_v9  ;;  %v371_v9 = vld [vmem:[%s1461_s2 + $0x40] sm:$0xff] }
  0x4b   :  { %814 = vmatpush3.msra.mxu1 %v1105_v10  ;;  %780 = vmatprep.subr.mxu0 %v993_v2  ;;  %v385_v10 = vld [vmem:[%s1462_s3 + $0x30] sm:$0xff] }
  0x4c   :  { %815 = vmatprep.subr.mxu1 %v993_v2  ;;  %781 = vmatpush3.msra.mxu0 %v1113_v11  ;;  %v370_v11 = vld [vmem:[%s1461_s2 + $0x38] sm:$0xff] }
  0x4d   :  { %816 = vmatpush3.msra.mxu1 %v1119_v12  ;;  %782 = vmatprep.subr.mxu0 %v993_v2  ;;  %v384_v12 = vld [vmem:[%s1462_s3 + $0x28] sm:$0xff] }
  0x4e   :  { %817 = vmatprep.subr.mxu1 %v993_v2  ;;  %783 = vmatpush3.msra.mxu0 %v1127_v13  ;;  %v369_v13 = vld [vmem:[%s1461_s2 + $0x30] sm:$0xff] }
  0x4f   :  { %818 = vmatpush3.msra.mxu1 %v1133_v14  ;;  %784 = vmatprep.subr.mxu0 %v993_v2  ;;  %v383_v14 = vld [vmem:[%s1462_s3 + $0x20] sm:$0xff] }
  0x50   :  { %819 = vmatprep.subr.mxu1 %v993_v2  ;;  %785 = vmatpush3.msra.mxu0 %v1141_v15  ;;  %v368_v15 = vld [vmem:[%s1461_s2 + $0x28] sm:$0xff] }
  0x51   :  { %820 = vmatpush3.msra.mxu1 %v1147_v16  ;;  %786 = vmatprep.subr.mxu0 %v993_v2  ;;  %v382_v16 = vld [vmem:[%s1462_s3 + $0x18] sm:$0xff] }
  0x52   :  { %821 = vmatprep.subr.mxu1 %v993_v2  ;;  %787 = vmatpush3.msra.mxu0 %v1155_v17  ;;  %v367_v17 = vld [vmem:[%s1461_s2 + $0x20] sm:$0xff] }
  0x53   :  { %822 = vmatpush3.msra.mxu1 %v1161_v18  ;;  %788 = vmatprep.subr.mxu0 %v993_v2  ;;  %v381_v18 = vld [vmem:[%s1462_s3 + $0x10] sm:$0xff] }
  0x54   :  { %823 = vmatprep.subr.mxu1 %v993_v2  ;;  %789 = vmatpush3.msra.mxu0 %v1169_v19  ;;  %v366_v19 = vld [vmem:[%s1461_s2 + $0x18] sm:$0xff] }
  0x55   :  { %824 = vmatpush3.msra.mxu1 %v1175_v20  ;;  %790 = vmatprep.subr.mxu0 %v993_v2  ;;  %v380_v20 = vld [vmem:[%s1462_s3 + $0x8] sm:$0xff] }
  0x56   :  { %825 = vmatprep.subr.mxu1 %v993_v2  ;;  %791 = vmatpush3.msra.mxu0 %v1183_v21  ;;  %v365_v21 = vld [vmem:[%s1461_s2 + $0x10] sm:$0xff] }
  0x57   :  { %826 = vmatpush3.msra.mxu1 %v1189_v22  ;;  %792 = vmatprep.subr.mxu0 %v993_v2  ;;  %v379_v22 = vld [vmem:[%s1462_s3] sm:$0xff] }
  0x58   :  { %827 = vmatprep.subr.mxu1 %v993_v2  ;;  %793 = vmatpush3.msra.mxu0 %v1197_v23  ;;  %v364_v23 = vld [vmem:[%s1461_s2 + $0x8] sm:$0xff] }
  0x59   :  { %828 = vmatpush3.msra.mxu1 %v1203_v24  ;;  %794 = vmatprep.subr.mxu0 %v993_v2  ;;  %v363_v24 = vld [vmem:[%s1461_s2] sm:$0xff] }
  0x5a   :  { %829 = vmatprep.subr.mxu1 %v993_v2  ;;  %795 = vmatpush3.msra.mxu0 %v1211_v25 }
  0x5b   :  { %830 = vmatpush3.msra.mxu1 %v1217_v26  ;;  %796 = vmatprep.subr.mxu0 %v993_v2 }
  0x5c   :  { %831 = vmatprep.subr.mxu1 %v993_v2  ;;  %797 = vmatpush3.msra.mxu0 %v1225_v27 }
  0x5d   :  { %802 = vmatprep.mubr.msk.f32.mxu0 %vm994_vm0, %v993_v2  ;;  %798 = vmatprep.subr.mxu0 %v993_v2 }
  0x5e   :  { %832 = vmatpush3.msra.mxu1 %v1231_v28  ;;  %799 = vmatpush3.msra.mxu0 %v1239_v29 }
  0x5f   :  { %833 = vmatprep.subr.mxu1 %v993_v2  ;;  %800 = vmatprep.subr.mxu0 %v993_v2 }
  0x60   :  { %834 = vmatpush3.msra.mxu1 %v1245_v30  ;;  %801 = vmatpush3.msra.mxu0 %v1253_v31 }
  0x61   :  { %835 = vmatprep.subr.mxu1 %v993_v2  ;;  %837 = vmatprep.mubr.msk.f32.mxu1 %vm994_vm0, %v993_v2  ;;  %v389_v2 = vld [vmem:[%s1462_s3 + $0x50] sm:$0xff]  ;;  %s995_s3 = smov [#allocation4]  }
  0x62   :  { %836 = vmatpush3.msra.mxu1 %v1259_v32  ;;  %840 = vmatprep.subr.mxu0 %v394_v51  ;;  %s566_s27 = sshll.u32 %s995_s3, 4  ;;  %s567_s27 = int_to_ptr.vmem [resolvable:$true] %s566_s27 }
  0x63   :  { %875 = vmatprep.subr.mxu1 %v378_v52  ;;  %s929_s28 = scalar_lea.vmem %s567_s27, 256  ;;  %p934_p1 = scmp.lt.s32.totalorder %s567_s27, %s567_s27 }
  0x64   :  { %p930_p0 = scmp.ne.s32.totalorder %s567_s27, %s929_s28  ;;  %p935_p2 = scmp.lt.s32.totalorder %s929_s28, %s929_s28 }
  0x66   :  { %p936_p3 = por %p935_p2, %p934_p1 }
  0x68   :  { %p937_p4 = pnand %p936_p3, %p930_p0 }
 0x101   :  { %v122_v37 = vpop.f32.mrf.mxu0 }
 0x102   :  { %v192_v38 = vpop.f32.mrf.mxu1  ;;  %196 = vst [vmem:[#allocation6] sm:$0xff] %v122_v37  ;;  %v201_v39 = vsel %vm200_vm1, %v122_v37, -1e+30 }
 0x103   :  { %197 = vst [vmem:[#allocation6 + $0x8] sm:$0xff] %v192_v38  ;;  %203 = vmax.xlane.f32.xlu0 %v201_v39  ;;  %v734_v40 = vpop.f32.mrf.mxu0  ;;  %v202_v42 = vsel %vm200_vm1, %v192_v38, -1e+30 }
 0x104   :  { %v769_v41 = vpop.f32.mrf.mxu1 }
 0x107   :  { %205 = vmax.xlane.f32.xlu0 %v202_v42 }
 0x18c   :  { %v204_v43 = vpop.xlane.xlu0 %203 }
 0x18d   :  { %v207_v44 = vsub.f32 %v201_v39, %v204_v43 }
 0x18f   :  { %v209_v45 = vmul.f32 1.442695, %v207_v44 }
 0x190   :  { %v206_v46 = vpop.xlane.xlu0 %205 }
 0x191   :  { %917 = vpow2.f32 %v209_v45  ;;  %v208_v47 = vsub.f32 %v202_v42, %v206_v46 }
 0x193   :  { %v211_v48 = vmul.f32 1.442695, %v208_v47 }
 0x195   :  { %919 = vpow2.f32 %v211_v48 }
 0x19e   :  { %v918_v49 = vpop.eup %917 }
 0x19f   :  { %213 = vadd.xlane.f32.xlu1 %v918_v49 }
 0x1a2   :  { %v920_v50 = vpop.eup %919 }
 0x1a3   :  { %215 = vadd.xlane.f32.xlu1 %v920_v50 }
 0x228   :  { %v214_v53 = vpop.xlane.xlu1 %213 }
 0x229   :  { %921 = vrcp.f32 %v214_v53 }
 0x22c   :  { %v216_v54 = vpop.xlane.xlu1 %215 }
 0x22d   :  { %923 = vrcp.f32 %v216_v54 }
 0x236   :  { %v922_v55 = vpop.eup %921 }
 0x237   :  { %v218_v56 = vmul.f32 %v922_v55, %v918_v49 }
 0x239   :  { %803 = vmatmul.mubr.f32.vlgmr.msra.gmra.mxu0 %v218_v56  ;;  %221 = vst [vmem:[#allocation4] sm:$0xff] %v218_v56 }
 0x23a   :  { %v924_v58 = vpop.eup %923  ;;  %841 = vmatpush3.msra.mxu0 %v394_v51  ;;  %872 = vmatprep.mubr.f32.mxu0 %v1266_v33 }
 0x23b   :  { %v220_v60 = vmul.f32 %v924_v58, %v920_v50  ;;  %842 = vmatprep.subr.mxu0 %v393_v57 }
 0x23c   :  { %843 = vmatpush3.msra.mxu0 %v393_v57 }
 0x23d   :  { %838 = vmatmul.mubr.f32.vlgmr.msra.gmra.mxu1 %v220_v60  ;;  %222 = vst [vmem:[#allocation4 + $0x8] sm:$0xff] %v220_v60  ;;  %844 = vmatprep.subr.mxu0 %v392_v59 }
 0x23e   :  { %876 = vmatpush3.msra.mxu1 %v378_v52  ;;  %845 = vmatpush3.msra.mxu0 %v392_v59 }
 0x23f   :  { %877 = vmatprep.subr.mxu1 %v377_v61  ;;  %846 = vmatprep.subr.mxu0 %v391_v62 }
 0x240   :  { %878 = vmatpush3.msra.mxu1 %v377_v61  ;;  %847 = vmatpush3.msra.mxu0 %v391_v62 }
 0x241   :  { %879 = vmatprep.subr.mxu1 %v376_v63  ;;  %848 = vmatprep.subr.mxu0 %v390_v0 }
 0x242   :  { %880 = vmatpush3.msra.mxu1 %v376_v63  ;;  %849 = vmatpush3.msra.mxu0 %v390_v0 }
 0x243   :  { %881 = vmatprep.subr.mxu1 %v375_v1  ;;  %850 = vmatprep.subr.mxu0 %v389_v2 }
 0x244   :  { %882 = vmatpush3.msra.mxu1 %v375_v1  ;;  %851 = vmatpush3.msra.mxu0 %v389_v2 }
 0x245   :  { %883 = vmatprep.subr.mxu1 %v374_v3  ;;  %852 = vmatprep.subr.mxu0 %v388_v4 }
 0x246   :  { %884 = vmatpush3.msra.mxu1 %v374_v3  ;;  %853 = vmatpush3.msra.mxu0 %v388_v4 }
 0x247   :  { %885 = vmatprep.subr.mxu1 %v373_v5  ;;  %854 = vmatprep.subr.mxu0 %v387_v6 }
 0x248   :  { %886 = vmatpush3.msra.mxu1 %v373_v5  ;;  %855 = vmatpush3.msra.mxu0 %v387_v6 }
 0x249   :  { %887 = vmatprep.subr.mxu1 %v372_v7  ;;  %856 = vmatprep.subr.mxu0 %v386_v8 }
 0x24a   :  { %888 = vmatpush3.msra.mxu1 %v372_v7  ;;  %857 = vmatpush3.msra.mxu0 %v386_v8 }
 0x24b   :  { %889 = vmatprep.subr.mxu1 %v371_v9  ;;  %858 = vmatprep.subr.mxu0 %v385_v10 }
 0x24c   :  { %890 = vmatpush3.msra.mxu1 %v371_v9  ;;  %859 = vmatpush3.msra.mxu0 %v385_v10 }
 0x24d   :  { %891 = vmatprep.subr.mxu1 %v370_v11  ;;  %860 = vmatprep.subr.mxu0 %v384_v12 }
 0x24e   :  { %892 = vmatpush3.msra.mxu1 %v370_v11  ;;  %861 = vmatpush3.msra.mxu0 %v384_v12 }
 0x24f   :  { %893 = vmatprep.subr.mxu1 %v369_v13  ;;  %862 = vmatprep.subr.mxu0 %v383_v14 }
 0x250   :  { %894 = vmatpush3.msra.mxu1 %v369_v13  ;;  %863 = vmatpush3.msra.mxu0 %v383_v14 }
 0x251   :  { %895 = vmatprep.subr.mxu1 %v368_v15  ;;  %864 = vmatprep.subr.mxu0 %v382_v16 }
 0x252   :  { %896 = vmatpush3.msra.mxu1 %v368_v15  ;;  %865 = vmatpush3.msra.mxu0 %v382_v16 }
 0x253   :  { %897 = vmatprep.subr.mxu1 %v367_v17  ;;  %866 = vmatprep.subr.mxu0 %v381_v18 }
 0x254   :  { %898 = vmatpush3.msra.mxu1 %v367_v17  ;;  %867 = vmatpush3.msra.mxu0 %v381_v18 }
 0x255   :  { %899 = vmatprep.subr.mxu1 %v366_v19  ;;  %868 = vmatprep.subr.mxu0 %v380_v20 }
 0x256   :  { %900 = vmatpush3.msra.mxu1 %v366_v19  ;;  %869 = vmatpush3.msra.mxu0 %v380_v20 }
 0x257   :  { %901 = vmatprep.subr.mxu1 %v365_v21  ;;  %870 = vmatprep.subr.mxu0 %v379_v22 }
 0x258   :  { %902 = vmatpush3.msra.mxu1 %v365_v21  ;;  %871 = vmatpush3.msra.mxu0 %v379_v22 }
 0x259   :  { %903 = vmatprep.subr.mxu1 %v364_v23  ;;  %873 = vmatmul.mubr.f32.vlgmr.msra.gmra.mxu0 %v1271_v34 }
 0x25a   :  { %904 = vmatpush3.msra.mxu1 %v364_v23 }
 0x25b   :  { %905 = vmatprep.subr.mxu1 %v363_v24 }
 0x25c   :  { %906 = vmatpush3.msra.mxu1 %v363_v24 }
 0x2f9   :  { %v289_v25 = vpop.f32.mrf.mxu0 }
 0x2fa   :  { %907 = vmatprep.mubr.f32.mxu1 %v289_v25 }
 0x2fb   :  { %v804_v26 = vpop.f32.mrf.mxu0 }
 0x2fd   :  { %v359_v27 = vpop.f32.mrf.mxu1 }
 0x2fe   :  { %908 = vmatmul.mubr.f32.vlgmr.msra.gmra.mxu1 %v359_v27 }
 0x2ff   :  { %v839_v28 = vpop.f32.mrf.mxu1 }
 0x300   :  { %940 = shalt.err (!%p937_p4)
}
 0x301   :  { %s996_s2 = smov 128   ;;  %s997_s29 = smov 8  }
 0x302   :  { %572 = dma.vmem_to_hbm [thread:$0]  %s567_s27, 256, %s1464_s5, [#allocation5], %s996_s2, %s996_s2, %s997_s29  }
 0x303   :  { %s998_s8 = smov [#allocation6]  }
 0x304   :  { %s578_s9 = sshll.u32 %s998_s8, 4  ;;  %s579_s9 = int_to_ptr.vmem [resolvable:$true] %s578_s9 }
 0x305   :  { %s949_s10 = scalar_lea.vmem %s579_s9, 256  ;;  %p954_p6 = scmp.lt.s32.totalorder %s579_s9, %s579_s9 }
 0x306   :  { %p950_p5 = scmp.ne.s32.totalorder %s579_s9, %s949_s10  ;;  %p955_p7 = scmp.lt.s32.totalorder %s949_s10, %s949_s10 }
 0x308   :  { %p956_p8 = por %p955_p7, %p954_p6 }
 0x30a   :  { %p957_p9 = pnand %p956_p8, %p950_p5 }
 0x30c   :  { %960 = shalt.err (!%p957_p9)
}
 0x30d   :  { %584 = dma.vmem_to_hbm [thread:$0]  %s579_s9, 256, %s1465_s6, [#allocation5], %s996_s2, %s996_s2, %s997_s29  }
 0x30e   :  { %s999_s5 = smov [#allocation2]  }
 0x30f   :  { %s554_s13 = sshll.u32 %s999_s5, 4  ;;  %s555_s13 = int_to_ptr.vmem [resolvable:$true] %s554_s13 }
 0x310   :  { %s969_s14 = scalar_lea.vmem %s555_s13, 256  ;;  %p974_p11 = scmp.lt.s32.totalorder %s555_s13, %s555_s13 }
 0x311   :  { %p970_p10 = scmp.ne.s32.totalorder %s555_s13, %s969_s14  ;;  %p975_p12 = scmp.lt.s32.totalorder %s969_s14, %s969_s14 }
 0x313   :  { %p976_p13 = por %p975_p12, %p974_p11 }
 0x315   :  { %p977_p0 = pnand %p976_p13, %p970_p10 }
 0x319   :  { %v874_v29 = vpop.f32.mrf.mxu0 }
 0x31b   :  { %v461_v32 = vpop.f32.mrf.mxu0 }
 0x3be   :  { %v909_v30 = vpop.f32.mrf.mxu1 }
 0x3bf   :  { %v542_v31 = vadd.f32 %v909_v30, %v874_v29 }
 0x3c0   :  { %v536_v33 = vpop.f32.mrf.mxu1 }
 0x3c1   :  { %925 = vtanh.f32 %v542_v31  ;;  %v537_v34 = vadd.f32 %v536_v33, %v461_v32 }
 0x3c3   :  { %927 = vtanh.f32 %v537_v34 }
 0x3ce   :  { %v926_v35 = vpop.eup %925 }
 0x3cf   :  { %548 = vst [vmem:[#allocation2 + $0x8] sm:$0xff] %v926_v35 }
 0x3d0   :  { %v928_v36 = vpop.eup %927 }
 0x3d1   :  { %547 = vst [vmem:[#allocation2] sm:$0xff] %v928_v36 }
 0x3d2   :  { %980 = shalt.err (!%p977_p0)
}
 0x3d3   :  { %560 = dma.vmem_to_hbm [thread:$0]  %s555_s13, 256, %s1463_s4, [#allocation3], %s996_s2, %s996_s2, %s997_s29  }
 0x3d4   :  { %989 = dma.done.wait [#allocation3], 256  }
 0x3d5   :  { %990 = vsyncadd [#allocation3], 4294967040 }
 0x3d6   :  { %991 = dma.done.wait [#allocation5], 512  }
 0x3d7   :  { %992 = vsyncadd [#allocation5], 4294966784 }
 0x3d8   :  { %594 = vsyncpa [#allocation3], 1 }
 0x3d9   :  { %595 = vsyncpa [#allocation5], 1 }

</bundles_post_ra>
